<compile_context>
chip_gen: v7x
topology: tpu7x:2x2x1
jax: 0.10.0
libtpu: 0.0.40
codegen_flags: <defaults>
</compile_context>

<pallas_src>
import functools

import jax
import jax.numpy as jnp
from jax.experimental import pallas as pl
from jax.experimental.pallas import tpu as pltpu


# ------------------------------ activation helper ------------------------------

def _mish_sigmoid_gate(z):
    # z: f32. Stable softplus: max(z,0) + log1p(exp(-|z|)) -- no inf intermediates.
    softplus = jnp.maximum(z, 0.0) + jnp.log1p(jnp.exp(-jnp.abs(z)))
    mish = z * jnp.tanh(softplus)
    # mish(z) >= ~-0.31, so exp(-mish) cannot overflow; plain sigmoid is safe here.
    return 1.0 / (1.0 + jnp.exp(-mish))


# ------------------------------ fused single-pass path ------------------------------

def _se_fused_kernel(x_ref, w_ref, o_ref, *, inv_hw):
    # x_ref: (Bb, HW, C)  channels in the lane dimension
    # w_ref: (C_in, C_out) (transposed conv weight)
    xf = x_ref[...].astype(jnp.float32)
    mean = jnp.sum(xf, axis=1) * inv_hw                                  # (Bb, C) f32
    z = jnp.dot(mean, w_ref[...].astype(jnp.float32),
                preferred_element_type=jnp.float32)                      # (Bb, C)
    gate = _mish_sigmoid_gate(z)                                         # (Bb, C)
    o_ref[...] = (xf * gate[:, None, :]).astype(o_ref.dtype)


def _se_fused(xr, wt, bb, vmem_limit):
    B, HW, C = xr.shape
    kernel = functools.partial(_se_fused_kernel, inv_hw=1.0 / HW)
    return pl.pallas_call(
        kernel,
        out_shape=jax.ShapeDtypeStruct((B, HW, C), xr.dtype),
        grid_spec=pltpu.PrefetchScalarGridSpec(
            num_scalar_prefetch=0,
            grid=(B // bb,),
            in_specs=[
                pl.BlockSpec((bb, HW, C), lambda b: (b, 0, 0)),
                pl.BlockSpec((C, C), lambda b: (0, 0)),   # weight stays resident
            ],
            out_specs=pl.BlockSpec((bb, HW, C), lambda b: (b, 0, 0)),
        ),
        compiler_params=pltpu.CompilerParams(
            dimension_semantics=("parallel",),
            vmem_limit_bytes=vmem_limit,
        ),
    )(xr, wt)


# ------------------------------ spatial-chunked fallback ------------------------------

def _se_pool_gate_kernel(x_ref, w_ref, g_ref, sum_ref, *, inv_hw):
    # x_ref: (hw_chunk, C); w_ref: (C, C); g_ref: (1, C); sum_ref: (1, C) f32 scratch
    k = pl.program_id(1)

    @pl.when(k == 0)
    def _():
        sum_ref[...] = jnp.zeros_like(sum_ref)

    sum_ref[...] += jnp.sum(x_ref[...].astype(jnp.float32), axis=0, keepdims=True)

    @pl.when(k == pl.num_programs(1) - 1)
    def _():
        mean = sum_ref[...] * inv_hw                                     # (1, C)
        z = jnp.dot(mean, w_ref[...].astype(jnp.float32),
                    preferred_element_type=jnp.float32)
        g_ref[...] = _mish_sigmoid_gate(z).astype(g_ref.dtype)


def _se_scale_kernel(x_ref, g_ref, o_ref):
    xf = x_ref[...].astype(jnp.float32)          # (hw_chunk, C)
    gf = g_ref[...].astype(jnp.float32)          # (1, C)
    o_ref[...] = (xf * gf).astype(o_ref.dtype)


def _se_chunked(xr, wt, hw_chunk, vmem_limit):
    # Two-sweep fallback when one (HW, C) slab does not fit VMEM (e.g. large C*HW on
    # v7x's 64 MiB): sweep 1 accumulates channel sums + computes the gate, sweep 2
    # re-streams x and applies the gate.
    B, HW, C = xr.shape
    hw_pad = ((HW + hw_chunk - 1) // hw_chunk) * hw_chunk
    xp = xr if hw_pad == HW else jnp.pad(xr, ((0, 0), (0, hw_pad - HW), (0, 0)))
    n_hw = hw_pad // hw_chunk

    pool_kernel = functools.partial(_se_pool_gate_kernel, inv_hw=1.0 / HW)
    gate = pl.pallas_call(
        pool_kernel,
        out_shape=jax.ShapeDtypeStruct((B, 1, C), jnp.float32),
        grid_spec=pltpu.PrefetchScalarGridSpec(
            num_scalar_prefetch=0,
            grid=(B, n_hw),
            in_specs=[
                pl.BlockSpec((pl.Squeezed(), hw_chunk, C), lambda b, k: (b, k, 0)),
                pl.BlockSpec((C, C), lambda b, k: (0, 0)),
            ],
            out_specs=pl.BlockSpec((pl.Squeezed(), 1, C), lambda b, k: (b, 0, 0)),
            scratch_shapes=[pltpu.VMEM((1, C), jnp.float32)],
        ),
        compiler_params=pltpu.CompilerParams(
            dimension_semantics=("parallel", "arbitrary"),
            vmem_limit_bytes=vmem_limit,
        ),
    )(xp, wt)

    out = pl.pallas_call(
        _se_scale_kernel,
        out_shape=jax.ShapeDtypeStruct((B, hw_pad, C), xr.dtype),
        grid_spec=pltpu.PrefetchScalarGridSpec(
            num_scalar_prefetch=0,
            grid=(B, n_hw),
            in_specs=[
                pl.BlockSpec((pl.Squeezed(), hw_chunk, C), lambda b, k: (b, k, 0)),
                pl.BlockSpec((pl.Squeezed(), 1, C), lambda b, k: (b, 0, 0)),
            ],
            out_specs=pl.BlockSpec((pl.Squeezed(), hw_chunk, C), lambda b, k: (b, k, 0)),
        ),
        compiler_params=pltpu.CompilerParams(
            dimension_semantics=("parallel", "parallel"),
            vmem_limit_bytes=vmem_limit,
        ),
    )(xp, gate)

    return out[:, :HW, :] if hw_pad != HW else out


# ------------------------------ wrapper ------------------------------

def _vmem_capacity_bytes():
    try:
        return int(pltpu.get_tpu_info().vmem_capacity_bytes)
    except Exception:
        return 64 << 20  # conservative default (v7x per-TensorCore VMEM)


def se_attention(x, w, *, max_block_bytes=None):
    """x: (B, C, H, W); w: (C_out, C_in) from Conv2d(C, C, 1, bias=False). -> (B, C, H, W)."""
    B, C, H, W = x.shape
    HW = H * W
    esize = jnp.dtype(x.dtype).itemsize

    # Channel-in-lane layout and transposed weight so the gate matmul is (Bb,C)@(C,C).
    xr = jnp.transpose(x.reshape(B, C, HW), (0, 2, 1))   # (B, HW, C)
    wt = jnp.transpose(w)                                # (C_in, C_out)

    # VMEM budgeting: v7x has 64 MiB/TC vs 128 MiB on v5e/v6e.
    vmem_cap = _vmem_capacity_bytes()
    vmem_limit = min(int(vmem_cap * 3 // 4), 100 << 20)
    budget = int(vmem_limit * 0.85) if max_block_bytes is None else int(max_block_bytes)

    def fused_bytes(bb):
        # double-buffered input + output slabs + (conservatively) double-buffered weight
        return 4 * bb * HW * C * esize + 2 * C * C * esize

    if fused_bytes(1) <= budget:
        # Largest batch block that fits, but keep >= 2 grid steps when B >= 2 so both
        # TensorCores on v7x get work (no measured cost on v5e/v6e).
        cap = max(1, B // 2)
        bb = 1
        for cand in range(1, cap + 1):
            if B % cand == 0 and fused_bytes(cand) <= budget:
                bb = cand
        out = _se_fused(xr, wt, bb, vmem_limit)
    else:
        # 4 copies of a (hw_chunk, C) slab must fit; keep hw_chunk a multiple of 8.
        hw_chunk = max(8, (budget // (4 * C * esize)) // 8 * 8)
        hw_chunk = min(hw_chunk, ((HW + 7) // 8) * 8)
        out = _se_chunked(xr, wt, hw_chunk, vmem_limit)

    return jnp.transpose(out, (0, 2, 1)).reshape(B, C, H, W)


# ------------------------------ reference & test ------------------------------

def _reference(x, w):
    mean = jnp.mean(x, axis=(2, 3))                                      # (B, C)
    z = mean @ w.T                                                       # conv1x1, no bias
    softplus = jnp.maximum(z, 0.0) + jnp.log1p(jnp.exp(-jnp.abs(z)))
    mish = z * jnp.tanh(softplus)
    y = 1.0 / (1.0 + jnp.exp(-mish))
    return x * y[:, :, None, None]


if __name__ == "__main__":
    key = jax.random.PRNGKey(0)
    kx, kw = jax.random.split(key)

    B, C, H, W = 2, 4, 16, 16
    x = jax.random.normal(kx, (B, C, H, W), dtype=jnp.float32)
    # Conv2d(C, C, 1, bias=False) weight, kaiming_normal_(mode='fan_out'): std = sqrt(2/C).
    w = jax.random.normal(kw, (C, C), dtype=jnp.float32) * jnp.sqrt(2.0 / C)

    ref = _reference(x, w)

    # Fused single-pass path (normal operation).
    out = se_attention(x, w)
    jax.block_until_ready(out)
    assert jnp.allclose(out, ref, atol=1e-5, rtol=1e-5), "fused path mismatch vs reference"

    # Force the spatial-chunked fallback path (tiny block budget) to verify it too.
    out2 = se_attention(x, w, max_block_bytes=2048)
    jax.block_until_ready(out2)
    assert jnp.allclose(out2, ref, atol=1e-5, rtol=1e-5), "chunked path mismatch vs reference"

    print("KERNEL_OK")
</pallas_src>

<mosaic_0001>
module attributes {stable_mosaic.version = 11 : i64} {
  func.func @_se_fused_kernel(%arg0: i32, %arg1: memref<1x256x4xf32, #tpu.memory_space<vmem>>, %arg2: memref<4x4xf32, #tpu.memory_space<vmem>>, %arg3: memref<1x256x4xf32, #tpu.memory_space<vmem>>) attributes {dimension_semantics = [#tpu.dimension_semantics<parallel>], iteration_bounds = array<i64: 2>, scalar_prefetch = 0 : i64, scratch_operands = 0 : i64, tpu.core_type = #tpu.core_type<tc>, window_params = [{transform_indices = @transform_0, window_bounds = array<i64: 1, 256, 4>}, {pipeline_mode = #tpu.pipeline_mode<synchronous>, transform_indices = @transform_1, window_bounds = array<i64: 4, 4>}, {transform_indices = @transform_2, window_bounds = array<i64: 1, 256, 4>}]} {
    %c0 = arith.constant 0 : index
    %c0_0 = arith.constant 0 : index
    %c0_1 = arith.constant 0 : index
    %0 = vector.load %arg1[%c0, %c0_0, %c0_1] : memref<1x256x4xf32, #tpu.memory_space<vmem>>, vector<1x256x4xf32>
    %cst = arith.constant dense<0.000000e+00> : vector<1x4xf32>
    %1 = vector.multi_reduction <add>, %0, %cst [1] : vector<1x256x4xf32> to vector<1x4xf32>
    %cst_2 = arith.constant 3.906250e-03 : f32
    %2 = vector.broadcast %cst_2 : f32 to vector<1x4xf32>
    %3 = arith.mulf %1, %2 : vector<1x4xf32>
    %c0_3 = arith.constant 0 : index
    %c0_4 = arith.constant 0 : index
    %4 = vector.load %arg2[%c0_3, %c0_4] : memref<4x4xf32, #tpu.memory_space<vmem>>, vector<4x4xf32>
    %cst_5 = arith.constant dense<0.000000e+00> : vector<1x4xf32>
    %5 = tpu.matmul %3, %4, %cst_5 {dimension_numbers = #tpu.dot_dimension_numbers<[1], [0], [0], [1], [0, 0, 1, 1], [], []>} : vector<1x4xf32>, vector<4x4xf32>, vector<1x4xf32> -> vector<1x4xf32>
    %cst_6 = arith.constant 0.000000e+00 : f32
    %6 = vector.broadcast %cst_6 : f32 to vector<1x4xf32>
    %7 = arith.maximumf %5, %6 : vector<1x4xf32>
    %8 = math.absf %5 : vector<1x4xf32>
    %cst_7 = arith.constant 0.000000e+00 : f32
    %9 = vector.broadcast %cst_7 : f32 to vector<1x4xf32>
    %10 = arith.subf %9, %8 : vector<1x4xf32>
    %11 = math.exp %10 : vector<1x4xf32>
    %12 = math.log1p %11 : vector<1x4xf32>
    %13 = arith.addf %7, %12 : vector<1x4xf32>
    %14 = math.tanh %13 : vector<1x4xf32>
    %15 = arith.mulf %5, %14 : vector<1x4xf32>
    %cst_8 = arith.constant 0.000000e+00 : f32
    %16 = vector.broadcast %cst_8 : f32 to vector<1x4xf32>
    %17 = arith.subf %16, %15 : vector<1x4xf32>
    %18 = math.exp %17 : vector<1x4xf32>
    %cst_9 = arith.constant 1.000000e+00 : f32
    %19 = vector.broadcast %cst_9 : f32 to vector<1x4xf32>
    %20 = arith.addf %19, %18 : vector<1x4xf32>
    %cst_10 = arith.constant 1.000000e+00 : f32
    %21 = vector.broadcast %cst_10 : f32 to vector<1x4xf32>
    %22 = arith.divf %21, %20 : vector<1x4xf32>
    %23 = vector.shape_cast %22 : vector<1x4xf32> to vector<1x1x4xf32>
    %24 = vector.broadcast %23 : vector<1x1x4xf32> to vector<1x256x4xf32>
    %25 = arith.mulf %0, %24 : vector<1x256x4xf32>
    %c0_11 = arith.constant 0 : index
    %c0_12 = arith.constant 0 : index
    %c0_13 = arith.constant 0 : index
    %26 = vector.load %arg3[%c0_11, %c0_12, %c0_13] : memref<1x256x4xf32, #tpu.memory_space<vmem>>, vector<1x256x4xf32>
    tpu.vector_store %arg3[%c0_11, %c0_12, %c0_13], %25 {strides = array<i32>} : memref<1x256x4xf32, #tpu.memory_space<vmem>>, vector<1x256x4xf32>,
    return
  }
  func.func @transform_0(%arg0: i32) -> (i32, i32, i32) {
    %c0_i32 = arith.constant 0 : i32
    %c0_i32_0 = arith.constant 0 : i32
    %c0_i32_1 = arith.constant 0 : i32
    return %arg0, %c0_i32, %c0_i32_0 : i32, i32, i32
  }
  func.func @transform_1(%arg0: i32) -> (i32, i32) {
    %c0_i32 = arith.constant 0 : i32
    %c0_i32_0 = arith.constant 0 : i32
    %c0_i32_1 = arith.constant 0 : i32
    return %c0_i32, %c0_i32_0 : i32, i32
  }
  func.func @transform_2(%arg0: i32) -> (i32, i32, i32) {
    %c0_i32 = arith.constant 0 : i32
    %c0_i32_0 = arith.constant 0 : i32
    %c0_i32_1 = arith.constant 0 : i32
    return %arg0, %c0_i32, %c0_i32_0 : i32, i32, i32
  }
}

</mosaic_0001>

<bundles_post_ra>
// kernel: tpu_custom_call.1
= control target key start
LH: loop header
LB: loop body
LE: loop exit
PB: predicated region body
PF: predicated region fallthrough
CT: control target
= control target key end

     0   :  { %s538_s9 = smov 0   ;;  %s826_s0 = inlined_call_operand.vmem [shape: f32[2,256,4], index: 0, kind: input, shape index: {}]   ;;  %s827_s1 = inlined_call_operand.vmem [shape: f32[4,4], index: 1, kind: input, shape index: {}]   ;;  %s828_s2 = inlined_call_operand.vmem [shape: f32[2,256,4], index: 2, kind: output, shape index: {}]  }
   0x1 LB: > { %s471_s10 = sadd.s32 4294967295, %s519_s9   ;;  %p475_p0 = scmp.ge.s32.totalorder %s519_s9, 1  ;;  %s519_s9 = sphi %s538_s9, %s12_s9  }
   0x2   : > { %p112_p1 = scmp.lt.s32.totalorder %s519_s9, 3 }
   0x4   : > { %p113_p2 = pnand %p475_p0, %p112_p1 }
   0x5   : > { %v247_v0 = vld [vmem:[%s827_s1] sm:$0xf] (!%p113_p2)  ;;  %vm251_vm0 = vcmask (!%p113_p2), 1043456   ;;  %p134_p3 = scmp.lt.s32.totalorder (!%p113_p2), %s471_s10, 1  ;;  %v521_v1 = vmov (!%p113_p2), 0.0   ;;  %vm522_vm1 = vmmov (!%p113_p2), 0  }
   0x6   : > { %116 = sbr.rel (%p113_p2) target bundleno = 403 (0x193), region = 28  ;;  %488 = vmatprep.subr.mxu0 (!%p113_p2), %v521_v1  ;;  %490 = vmatprep.mubr.msk.f32.mxu0 (!%p113_p2), %vm522_vm1, %v521_v1  ;;  %vm176_vm2 = vcmask (!%p113_p2), 31744  }
   0x7   : > { %489 = vmatpush3.msk.msra.mxu0 (!%p113_p2), %vm251_vm0, %v247_v0 }
   0xd   : > { %s830_s10 = smov (!%p134_p3, %s471_s10), 1 }
   0xe   : > { %s484_s13 = sshll.u32 %s830_s10, 8 }
   0xf   : > { %s557_s16 = scalar_lea.vmem %s826_s0, %s484_s13  ;;  %s725_s19 = scalar_lea.vmem %s828_s2, %s484_s13 }
  0x10   : > { %v560_v2 = vld [vmem:[%s557_s16] sm:$0xff]  ;;  %v563_v3 = vld [vmem:[%s557_s16 + $0x8] sm:$0xff]  ;;  %v566_v4 = vld [vmem:[%s557_s16 + $0x10] sm:$0xff] }
  0x11   : > { %v569_v5 = vld [vmem:[%s557_s16 + $0x18] sm:$0xff]  ;;  %v177_v6 = vsel %vm176_vm2, %v560_v2, 0.0  ;;  %v178_v7 = vsel %vm176_vm2, %v563_v3, 0.0  ;;  %v180_v8 = vsel %vm176_vm2, %v566_v4, 0.0  ;;  %v578_v9 = vld [vmem:[%s557_s16 + $0x20] sm:$0xff]  ;;  %v583_v12 = vld [vmem:[%s557_s16 + $0x28] sm:$0xff] }
  0x12   : > { %v179_v10 = vadd.f32 %v178_v7, %v177_v6  ;;  %v182_v11 = vsel %vm176_vm2, %v569_v5, 0.0  ;;  %v184_v14 = vsel %vm176_vm2, %v578_v9, 0.0  ;;  %v588_v15 = vld [vmem:[%s557_s16 + $0x30] sm:$0xff]  ;;  %v186_v17 = vsel %vm176_vm2, %v583_v12, 0.0  ;;  %v593_v18 = vld [vmem:[%s557_s16 + $0x38] sm:$0xff]  ;;  %v598_v21 = vld [vmem:[%s557_s16 + $0x40] sm:$0xff] }
  0x13   : > { %v188_v20 = vsel %vm176_vm2, %v588_v15, 0.0  ;;  %v190_v23 = vsel %vm176_vm2, %v593_v18, 0.0  ;;  %v603_v24 = vld [vmem:[%s557_s16 + $0x48] sm:$0xff]  ;;  %v192_v26 = vsel %vm176_vm2, %v598_v21, 0.0  ;;  %v608_v27 = vld [vmem:[%s557_s16 + $0x50] sm:$0xff]  ;;  %v613_v30 = vld [vmem:[%s557_s16 + $0x58] sm:$0xff] }
  0x14   : > { %v181_v13 = vadd.f32 %v180_v8, %v179_v10  ;;  %v194_v29 = vsel %vm176_vm2, %v603_v24, 0.0  ;;  %v196_v32 = vsel %vm176_vm2, %v608_v27, 0.0  ;;  %v618_v33 = vld [vmem:[%s557_s16 + $0x60] sm:$0xff]  ;;  %v198_v35 = vsel %vm176_vm2, %v613_v30, 0.0  ;;  %v623_v36 = vld [vmem:[%s557_s16 + $0x68] sm:$0xff]  ;;  %v628_v39 = vld [vmem:[%s557_s16 + $0x70] sm:$0xff] }
  0x15   : > { %v200_v38 = vsel %vm176_vm2, %v618_v33, 0.0  ;;  %v202_v41 = vsel %vm176_vm2, %v623_v36, 0.0  ;;  %v633_v42 = vld [vmem:[%s557_s16 + $0x78] sm:$0xff]  ;;  %v204_v44 = vsel %vm176_vm2, %v628_v39, 0.0  ;;  %v638_v45 = vld [vmem:[%s557_s16 + $0x80] sm:$0xff]  ;;  %v643_v48 = vld [vmem:[%s557_s16 + $0x88] sm:$0xff] }
  0x16   : > { %v183_v16 = vadd.f32 %v182_v11, %v181_v13  ;;  %v206_v47 = vsel %vm176_vm2, %v633_v42, 0.0  ;;  %v208_v50 = vsel %vm176_vm2, %v638_v45, 0.0  ;;  %v648_v51 = vld [vmem:[%s557_s16 + $0x90] sm:$0xff]  ;;  %v210_v53 = vsel %vm176_vm2, %v643_v48, 0.0  ;;  %v653_v54 = vld [vmem:[%s557_s16 + $0x98] sm:$0xff]  ;;  %v658_v57 = vld [vmem:[%s557_s16 + $0xa0] sm:$0xff] }
  0x17   : > { %v212_v56 = vsel %vm176_vm2, %v648_v51, 0.0  ;;  %v214_v59 = vsel %vm176_vm2, %v653_v54, 0.0  ;;  %v663_v60 = vld [vmem:[%s557_s16 + $0xa8] sm:$0xff]  ;;  %v216_v62 = vsel %vm176_vm2, %v658_v57, 0.0  ;;  %v668_v63 = vld [vmem:[%s557_s16 + $0xb0] sm:$0xff]  ;;  %v673_v6 = vld [vmem:[%s557_s16 + $0xb8] sm:$0xff] }
  0x18   : > { %v185_v19 = vadd.f32 %v184_v14, %v183_v16  ;;  %v218_v1 = vsel %vm176_vm2, %v663_v60, 0.0  ;;  %v220_v8 = vsel %vm176_vm2, %v668_v63, 0.0  ;;  %v678_v10 = vld [vmem:[%s557_s16 + $0xc0] sm:$0xff]  ;;  %v222_v13 = vsel %vm176_vm2, %v673_v6, 0.0  ;;  %v683_v14 = vld [vmem:[%s557_s16 + $0xc8] sm:$0xff] }
  0x1a   : > { %v187_v22 = vadd.f32 %v186_v17, %v185_v19  ;;  %v224_v17 = vsel %vm176_vm2, %v678_v10, 0.0  ;;  %v688_v19 = vld [vmem:[%s557_s16 + $0xd0] sm:$0xff] }
  0x1c   : > { %v189_v25 = vadd.f32 %v188_v20, %v187_v22  ;;  %v226_v22 = vsel %vm176_vm2, %v683_v14, 0.0 }
  0x1e   : > { %v191_v28 = vadd.f32 %v190_v23, %v189_v25  ;;  %v693_v23 = vld [vmem:[%s557_s16 + $0xd8] sm:$0xff] }
  0x20   : > { %v193_v31 = vadd.f32 %v192_v26, %v191_v28  ;;  %v228_v26 = vsel %vm176_vm2, %v688_v19, 0.0  ;;  %v698_v28 = vld [vmem:[%s557_s16 + $0xe0] sm:$0xff] }
  0x22   : > { %v195_v34 = vadd.f32 %v194_v29, %v193_v31  ;;  %v230_v31 = vsel %vm176_vm2, %v693_v23, 0.0 }
  0x24   : > { %v197_v37 = vadd.f32 %v196_v32, %v195_v34  ;;  %v703_v32 = vld [vmem:[%s557_s16 + $0xe8] sm:$0xff] }
  0x26   : > { %v199_v40 = vadd.f32 %v198_v35, %v197_v37  ;;  %v232_v35 = vsel %vm176_vm2, %v698_v28, 0.0  ;;  %v708_v37 = vld [vmem:[%s557_s16 + $0xf0] sm:$0xff] }
  0x28   : > { %v201_v43 = vadd.f32 %v200_v38, %v199_v40  ;;  %v234_v40 = vsel %vm176_vm2, %v703_v32, 0.0 }
  0x2a   : > { %v203_v46 = vadd.f32 %v202_v41, %v201_v43  ;;  %v713_v41 = vld [vmem:[%s557_s16 + $0xf8] sm:$0xff] }
  0x2c   : > { %v205_v49 = vadd.f32 %v204_v44, %v203_v46  ;;  %v236_v44 = vsel %vm176_vm2, %v708_v37, 0.0 }
  0x2e   : > { %v207_v52 = vadd.f32 %v206_v47, %v205_v49  ;;  %v238_v47 = vsel %vm176_vm2, %v713_v41, 0.0 }
  0x30   : > { %v209_v55 = vadd.f32 %v208_v50, %v207_v52 }
  0x32   : > { %v211_v58 = vadd.f32 %v210_v53, %v209_v55 }
  0x34   : > { %v213_v61 = vadd.f32 %v212_v56, %v211_v58 }
  0x36   : > { %v215_v0 = vadd.f32 %v214_v59, %v213_v61 }
  0x38   : > { %v217_v7 = vadd.f32 %v216_v62, %v215_v0 }
  0x3a   : > { %v219_v11 = vadd.f32 %v218_v1, %v217_v7 }
  0x3c   : > { %v221_v16 = vadd.f32 %v220_v8, %v219_v11 }
  0x3e   : > { %v223_v20 = vadd.f32 %v222_v13, %v221_v16 }
  0x40   : > { %v225_v25 = vadd.f32 %v224_v17, %v223_v20 }
  0x42   : > { %v227_v29 = vadd.f32 %v226_v22, %v225_v25 }
  0x44   : > { %v229_v34 = vadd.f32 %v228_v26, %v227_v29 }
  0x46   : > { %v231_v38 = vadd.f32 %v230_v31, %v229_v34 }
  0x48   : > { %v233_v43 = vadd.f32 %v232_v35, %v231_v38 }
  0x4a   : > { %v235_v46 = vadd.f32 %v234_v40, %v233_v43 }
  0x4c   : > { %v237_v49 = vadd.f32 %v236_v44, %v235_v46 }
  0x4e   : > { %v239_v50 = vadd.f32 %v238_v47, %v237_v49  ;;  %v348_v47 = vlaneseq }
  0x50   : > { %v240_v52 = vrot.slane %v239_v50, 4  ;;  %v349_v49 = vshrl.u32 %v348_v47, 7 }
  0x52   : > { %v241_v53 = vadd.f32 %v240_v52, %v239_v50  ;;  %v350_v50 = vsub.s32 0, %v349_v49 }
  0x54   : > { %v242_v55 = vrot.slane %v241_v53, 2 }
  0x56   : > { %v243_v56 = vadd.f32 %v242_v55, %v241_v53 }
  0x58   : > { %v244_v58 = vrot.slane %v243_v56, 1 }
  0x5a   : > { %v245_v59 = vadd.f32 %v244_v58, %v243_v56 }
  0x5c   : > { %v246_v61 = vmul.f32 0.00390625, %v245_v59 }
  0x5e   : > { %491 = vmatmul.mubr.msk.f32.vlgmr.msra.gmra.mrb[0].mxu0 %vm176_vm2, %v246_v61 }
 0x131   : > { %v321_v62 = vpop.f32.mrb[0].mxu0 }
 0x132   : > { %v326_v0 = vand.u32 2147483647, %v321_v62  ;;  %v492_v1 = vpop.f32.mrb[1].mxu0  ;;  %v325_v29 = vmax.f32 %v321_v62, 0.0 }
 0x134   : > { %v327_v7 = vsub.f32 0.0, %v326_v0 }
 0x136   : > { %v328_v8 = vmul.f32 1.442695, %v327_v7 }
 0x138   : > { %503 = vpow2.f32 %v328_v8 }
 0x142   : > { %v504_v11 = vpop.eup %503 }
 0x143   : > { %v330_v13 = vadd.f32 1.0, %v504_v11  ;;  %v333_v16 = vmul.f32 -0.5, %v504_v11  ;;  %v336_v20 = vand.u32 2147483647, %v504_v11 }
 0x145   : > { %505 = vlog2.f32 %v330_v13  ;;  %v334_v17 = vadd.f32 1.0, %v333_v16  ;;  %vm337_vm3 = vcmp.lt.f32.partialorder %v336_v20, 0.0004427343 }
 0x147   : > { %v335_v26 = vmul.f32 %v504_v11, %v334_v17 }
 0x14f   : > { %v506_v22 = vpop.eup %505 }
 0x150   : > { %v332_v25 = vmul.f32 0.6931472, %v506_v22 }
 0x152   : > { %v338_v31 = vsel %vm337_vm3, %v335_v26, %v332_v25 }
 0x153   : > { %v339_v34 = vadd.f32 %v338_v31, %v325_v29 }
 0x155   : > { %507 = vtanh.f32 %v339_v34 }
 0x15f   : > { %v508_v35 = vpop.eup %507 }
 0x160   : > { %v341_v38 = vmul.f32 %v508_v35, %v321_v62 }
 0x162   : > { %v342_v40 = vsub.f32 0.0, %v341_v38 }
 0x164   : > { %v343_v43 = vmul.f32 1.442695, %v342_v40 }
 0x166   : > { %509 = vpow2.f32 %v343_v43 }
 0x170   : > { %v510_v44 = vpop.eup %509 }
 0x171   : > { %v345_v46 = vadd.f32 1.0, %v510_v44 }
 0x173   : > { %511 = vrcp.f32 %v345_v46 }
 0x17d   : > { %v512_v52 = vpop.eup %511 }
 0x17e   : > { %v351_v53 = vrot.slane %v512_v52, %v350_v50 }
 0x180   : > { %v352_v55 = vmul.f32 %v351_v53, %v560_v2  ;;  %v353_v56 = vmul.f32 %v351_v53, %v563_v3  ;;  %v354_v58 = vmul.f32 %v351_v53, %v566_v4  ;;  %v355_v59 = vmul.f32 %v351_v53, %v569_v5 }
 0x181   : > { %v356_v61 = vmul.f32 %v351_v53, %v578_v9  ;;  %v357_v62 = vmul.f32 %v351_v53, %v583_v12  ;;  %v358_v0 = vmul.f32 %v351_v53, %v588_v15  ;;  %v359_v1 = vmul.f32 %v351_v53, %v593_v18 }
 0x182   : > { %v360_v2 = vmul.f32 %v351_v53, %v598_v21  ;;  %v361_v3 = vmul.f32 %v351_v53, %v603_v24  ;;  %v362_v4 = vmul.f32 %v351_v53, %v608_v27  ;;  %v363_v5 = vmul.f32 %v351_v53, %v613_v30  ;;  %384 = vst.msk [vmem:[%s725_s19] sm:$0xff] %vm176_vm2, %v352_v55 }
 0x183   : > { %385 = vst.msk [vmem:[%s725_s19 + $0x8] sm:$0xff] %vm176_vm2, %v353_v56  ;;  %386 = vst.msk [vmem:[%s725_s19 + $0x10] sm:$0xff] %vm176_vm2, %v354_v58  ;;  %v364_v9 = vmul.f32 %v351_v53, %v618_v33  ;;  %v365_v12 = vmul.f32 %v351_v53, %v623_v36  ;;  %v366_v15 = vmul.f32 %v351_v53, %v628_v39 }
 0x184   : > { %387 = vst.msk [vmem:[%s725_s19 + $0x18] sm:$0xff] %vm176_vm2, %v355_v59  ;;  %v367_v18 = vmul.f32 %v351_v53, %v633_v42  ;;  %388 = vst.msk [vmem:[%s725_s19 + $0x20] sm:$0xff] %vm176_vm2, %v356_v61  ;;  %v368_v21 = vmul.f32 %v351_v53, %v638_v45  ;;  %v369_v24 = vmul.f32 %v351_v53, %v643_v48 }
 0x185   : > { %389 = vst.msk [vmem:[%s725_s19 + $0x28] sm:$0xff] %vm176_vm2, %v357_v62  ;;  %390 = vst.msk [vmem:[%s725_s19 + $0x30] sm:$0xff] %vm176_vm2, %v358_v0  ;;  %v370_v27 = vmul.f32 %v351_v53, %v648_v51  ;;  %v371_v30 = vmul.f32 %v351_v53, %v653_v54  ;;  %v372_v33 = vmul.f32 %v351_v53, %v658_v57 }
 0x186   : > { %391 = vst.msk [vmem:[%s725_s19 + $0x38] sm:$0xff] %vm176_vm2, %v359_v1  ;;  %392 = vst.msk [vmem:[%s725_s19 + $0x40] sm:$0xff] %vm176_vm2, %v360_v2  ;;  %v373_v36 = vmul.f32 %v351_v53, %v663_v60  ;;  %v374_v39 = vmul.f32 %v351_v53, %v668_v63  ;;  %v375_v42 = vmul.f32 %v351_v53, %v673_v6 }
 0x187   : > { %393 = vst.msk [vmem:[%s725_s19 + $0x48] sm:$0xff] %vm176_vm2, %v361_v3  ;;  %394 = vst.msk [vmem:[%s725_s19 + $0x50] sm:$0xff] %vm176_vm2, %v362_v4  ;;  %v376_v45 = vmul.f32 %v351_v53, %v678_v10  ;;  %v377_v48 = vmul.f32 %v351_v53, %v683_v14  ;;  %v378_v51 = vmul.f32 %v351_v53, %v688_v19 }
 0x188   : > { %395 = vst.msk [vmem:[%s725_s19 + $0x58] sm:$0xff] %vm176_vm2, %v363_v5  ;;  %396 = vst.msk [vmem:[%s725_s19 + $0x60] sm:$0xff] %vm176_vm2, %v364_v9  ;;  %v379_v54 = vmul.f32 %v351_v53, %v693_v23  ;;  %v380_v57 = vmul.f32 %v351_v53, %v698_v28  ;;  %v381_v60 = vmul.f32 %v351_v53, %v703_v32 }
 0x189   : > { %397 = vst.msk [vmem:[%s725_s19 + $0x68] sm:$0xff] %vm176_vm2, %v365_v12  ;;  %398 = vst.msk [vmem:[%s725_s19 + $0x70] sm:$0xff] %vm176_vm2, %v366_v15  ;;  %v382_v63 = vmul.f32 %v351_v53, %v708_v37  ;;  %v383_v6 = vmul.f32 %v351_v53, %v713_v41 }
 0x18a   : > { %399 = vst.msk [vmem:[%s725_s19 + $0x78] sm:$0xff] %vm176_vm2, %v367_v18  ;;  %400 = vst.msk [vmem:[%s725_s19 + $0x80] sm:$0xff] %vm176_vm2, %v368_v21 }
 0x18b   : > { %401 = vst.msk [vmem:[%s725_s19 + $0x88] sm:$0xff] %vm176_vm2, %v369_v24  ;;  %402 = vst.msk [vmem:[%s725_s19 + $0x90] sm:$0xff] %vm176_vm2, %v370_v27 }
 0x18c   : > { %403 = vst.msk [vmem:[%s725_s19 + $0x98] sm:$0xff] %vm176_vm2, %v371_v30  ;;  %404 = vst.msk [vmem:[%s725_s19 + $0xa0] sm:$0xff] %vm176_vm2, %v372_v33 }
 0x18d   : > { %405 = vst.msk [vmem:[%s725_s19 + $0xa8] sm:$0xff] %vm176_vm2, %v373_v36  ;;  %406 = vst.msk [vmem:[%s725_s19 + $0xb0] sm:$0xff] %vm176_vm2, %v374_v39 }
 0x18e   : > { %407 = vst.msk [vmem:[%s725_s19 + $0xb8] sm:$0xff] %vm176_vm2, %v375_v42  ;;  %408 = vst.msk [vmem:[%s725_s19 + $0xc0] sm:$0xff] %vm176_vm2, %v376_v45 }
 0x18f   : > { %409 = vst.msk [vmem:[%s725_s19 + $0xc8] sm:$0xff] %vm176_vm2, %v377_v48  ;;  %410 = vst.msk [vmem:[%s725_s19 + $0xd0] sm:$0xff] %vm176_vm2, %v378_v51 }
 0x190   : > { %411 = vst.msk [vmem:[%s725_s19 + $0xd8] sm:$0xff] %vm176_vm2, %v379_v54  ;;  %412 = vst.msk [vmem:[%s725_s19 + $0xe0] sm:$0xff] %vm176_vm2, %v380_v57 }
 0x191   : > { %413 = vst.msk [vmem:[%s725_s19 + $0xe8] sm:$0xff] %vm176_vm2, %v381_v60  ;;  %414 = vst.msk [vmem:[%s725_s19 + $0xf0] sm:$0xff] %vm176_vm2, %v382_v63 }
 0x192   : > { %415 = vst.msk [vmem:[%s725_s19 + $0xf8] sm:$0xff] %vm176_vm2, %v383_v6 }
 0x193 PF: > { %s12_s9 = sadd.s32 1, %s519_s9  }
 0x194   : > { %p9_p4 = scmp.ge.s32.totalorder %s12_s9, 4  }
 0x196   :  { %11 = sbr.rel (!%p9_p4) target bundleno = 1 (0x1), region = 58 }

</bundles_post_ra>
